<compile_context>
chip_gen: v7x
topology: tpu7x:2x2x1
jax: 0.10.0
libtpu: 0.0.40
codegen_flags: <defaults>
</compile_context>

<pallas_src>
import math
import functools

import jax
import jax.numpy as jnp
import numpy as np
from jax import lax
from jax.experimental import pallas as pl
from jax.experimental.pallas import tpu as pltpu


_MASK_VALUE = -1e30  # finite sentinel: avoids -inf - (-inf) -> NaN


def _layernorm(v, scale, shift, eps=1e-5):
    mean = jnp.mean(v, axis=-1, keepdims=True)
    var = jnp.mean((v - mean) ** 2, axis=-1, keepdims=True)   # unbiased=False
    # rsqrt runs on the EUP slot; one VPU multiply instead of divide + sqrt.
    return scale * ((v - mean) * lax.rsqrt(var + eps)) + shift


def _gelu_tanh(x):
    c = math.sqrt(2.0 / math.pi)
    return 0.5 * x * (1.0 + jnp.tanh(c * (x + 0.044715 * x * x * x)))


def _split_heads(y, num_heads, head_dim):
    # (rows, D) -> (H, rows, hd) via static lane slices + a major-axis stack.
    # Runs ONCE per token tile in the projection kernel (not per KV step).
    return jnp.stack(
        [y[:, h * head_dim:(h + 1) * head_dim] for h in range(num_heads)],
        axis=0)


def _vmem_limit(n_bytes):
    # Requested tiles/weights/scratch + headroom, floored at 32 MiB,
    # capped well below the 128 MiB physical size (v5e/v6e).
    return int(min(max(n_bytes + (8 << 20), 32 << 20), 120 << 20))


# ---------------------------------------------------------------------------
# Phase 1: LN1 + fused Q/K/V projection, heads pre-split to (B, H, T, hd).
# ---------------------------------------------------------------------------
def qkv_projection_kernel(x_ref, ln1_s_ref, ln1_b_ref,
                          wq_ref, wk_ref, wv_ref,
                          q_ref, k_ref, v_ref,
                          *, num_heads, head_dim):
    cdt = wq_ref.dtype                                   # MXU input dtype
    inv_sqrt_d = 1.0 / math.sqrt(head_dim)
    x = x_ref[0].astype(jnp.float32)                     # (tt, D)
    h = _layernorm(x, ln1_s_ref[0], ln1_b_ref[0]).astype(cdt)
    q = jnp.dot(h, wq_ref[...], preferred_element_type=jnp.float32) * inv_sqrt_d
    k = jnp.dot(h, wk_ref[...], preferred_element_type=jnp.float32)
    v = jnp.dot(h, wv_ref[...], preferred_element_type=jnp.float32)
    q_ref[0] = _split_heads(q, num_heads, head_dim).astype(q_ref.dtype)
    k_ref[0] = _split_heads(k, num_heads, head_dim).astype(k_ref.dtype)
    v_ref[0] = _split_heads(v, num_heads, head_dim).astype(v_ref.dtype)


# ---------------------------------------------------------------------------
# Phase 2: flash attention (online softmax) + out-proj + residual + LN2 + FFN.
# ---------------------------------------------------------------------------
def attention_ffn_kernel(
    x_ref, q_ref, k_ref, v_ref,
    wo_ref, bo_ref, ln2_s_ref, ln2_b_ref,
    w1_ref, b1_ref, w2_ref, b2_ref,
    o_ref,
    m_scr, l_scr, acc_scr,
    *, num_heads, tq, tk,
):
    qi = pl.program_id(1)
    ki = pl.program_id(2)
    q_start = qi * tq
    q_end = q_start + tq - 1
    kv_start = ki * tk
    last_ki = q_end // tk            # last KV tile intersecting causality
    cdt = wo_ref.dtype               # MXU input dtype (f32 or bf16)

    # ---- init (once per (b, q-tile)): reset online-softmax state -----------
    @pl.when(ki == 0)
    def _init():
        m_scr[...] = jnp.full_like(m_scr, _MASK_VALUE)
        l_scr[...] = jnp.zeros_like(l_scr)
        acc_scr[...] = jnp.zeros_like(acc_scr)

    def _attend(apply_mask):
        # heads-as-batch scores; Q already carries 1/sqrt(hd): (H, tq, tk)
        s = jnp.einsum('hqd,hkd->hqk', q_ref[0], k_ref[0],
                       preferred_element_type=jnp.float32)
        if apply_mask:
            # (tq, tk) iotas, broadcast over heads (no (H, tq, tk) temporaries)
            row = q_start + lax.broadcasted_iota(jnp.int32, (tq, tk), 0)
            col = kv_start + lax.broadcasted_iota(jnp.int32, (tq, tk), 1)
            s = jnp.where((col > row)[None, :, :], _MASK_VALUE, s)
        m_prev = m_scr[...]                                      # (H, tq, 1)
        m_new = jnp.maximum(m_prev, jnp.max(s, axis=-1, keepdims=True))
        alpha = jnp.exp(m_prev - m_new)
        p = jnp.exp(s - m_new)
        l_scr[...] = alpha * l_scr[...] + jnp.sum(p, axis=-1, keepdims=True)
        acc_scr[...] = alpha * acc_scr[...] + jnp.einsum(
            'hqk,hkd->hqd', p.astype(cdt), v_ref[0],
            preferred_element_type=jnp.float32)
        m_scr[...] = m_new

    # Fast path: tile strictly below the diagonal -> no mask/iota work.
    @pl.when(kv_start + tk - 1 <= q_start)
    def _attend_unmasked():
        _attend(apply_mask=False)

    # Diagonal-straddling tile -> apply causal mask. Tiles fully above the
    # diagonal (kv_start > q_end) hit neither branch (and are never DMA'd,
    # thanks to the clamped index_map).
    @pl.when(jnp.logical_and(kv_start <= q_end, kv_start + tk - 1 > q_start))
    def _attend_masked():
        _attend(apply_mask=True)

    # ---- finalize: out-proj + residual + LN2 + FFN + residual --------------
    @pl.when(ki == last_ki)
    def _finalize():
        inv_l = pl.reciprocal(l_scr[...], approx=True)           # EUP slot
        ctx_h = acc_scr[...] * inv_l                             # (H, tq, hd)
        # head merge happens once per q-tile (amortized over all KV steps)
        ctx = jnp.concatenate([ctx_h[h] for h in range(num_heads)], axis=-1)
        attn = jnp.dot(ctx.astype(cdt), wo_ref[...],
                       preferred_element_type=jnp.float32) + bo_ref[0]
        # dropout (drop_rate=0.0) -> identity
        x1 = x_ref[0].astype(jnp.float32) + attn                 # residual 1
        h2 = _layernorm(x1, ln2_s_ref[0], ln2_b_ref[0])
        ff = jnp.dot(h2.astype(cdt), w1_ref[...],
                     preferred_element_type=jnp.float32) + b1_ref[0]
        ff = _gelu_tanh(ff)
        ff = jnp.dot(ff.astype(cdt), w2_ref[...],
                     preferred_element_type=jnp.float32) + b2_ref[0]
        o_ref[0] = (x1 + ff).astype(o_ref.dtype)                 # residual 2


def transformer_block(x, params, *, num_heads, q_tile=256, kv_tile=256,
                      proj_tile=256, compute_dtype=jnp.float32):
    """Forward pass of the TransformerBlock. On v5e use q_tile=kv_tile=128."""
    B, T, D = x.shape
    Hff = params["w_ff1"].shape[1]
    assert D % num_heads == 0
    head_dim = D // num_heads

    tq = min(q_tile, T)
    tk = min(kv_tile, T)
    tt = min(proj_tile, T)
    assert T % tq == 0 and T % tk == 0 and T % tt == 0, \
        "T must be divisible by the tile sizes"
    nq, nk, nt = T // tq, T // tk, T // tt

    cdt = jnp.dtype(compute_dtype)
    csz = cdt.itemsize
    xsz = jnp.dtype(x.dtype).itemsize
    # Cast weights once in the wrapper (bf16 halves weight DMA, f32 accumulate).
    wcast = lambda w: w.astype(cdt)

    # ---------------- Phase 1: Q/K/V projection (once per token) -----------
    proj_kernel = functools.partial(
        qkv_projection_kernel, num_heads=num_heads, head_dim=head_dim)
    qkv_shape = jax.ShapeDtypeStruct((B, num_heads, T, head_dim), cdt)

    proj_vmem = _vmem_limit(
        2 * (tt * D * xsz + 3 * num_heads * tt * head_dim * csz
             + 3 * D * D * csz + 2 * D * 4))

    q_hbm, k_hbm, v_hbm = pl.pallas_call(
        proj_kernel,
        out_shape=(qkv_shape, qkv_shape, qkv_shape),
        grid_spec=pltpu.PrefetchScalarGridSpec(
            num_scalar_prefetch=0,
            grid=(B, nt),
            in_specs=[
                pl.BlockSpec((1, tt, D), lambda b, t: (b, t, 0)),     # x
                pl.BlockSpec((1, D), lambda b, t: (0, 0)),            # ln1 scale
                pl.BlockSpec((1, D), lambda b, t: (0, 0)),            # ln1 shift
                pl.BlockSpec((D, D), lambda b, t: (0, 0)),            # Wq
                pl.BlockSpec((D, D), lambda b, t: (0, 0)),            # Wk
                pl.BlockSpec((D, D), lambda b, t: (0, 0)),            # Wv
            ],
            out_specs=[
                pl.BlockSpec((1, num_heads, tt, head_dim),
                             lambda b, t: (b, 0, t, 0)),
            ] * 3,
        ),
        compiler_params=pltpu.CompilerParams(
            dimension_semantics=("parallel", "parallel"),
            vmem_limit_bytes=proj_vmem),
    )(x, params["ln1_scale"], params["ln1_shift"],
      wcast(params["w_q"]), wcast(params["w_k"]), wcast(params["w_v"]))

    # ---------------- Phase 2: flash attention + fused LN2/FFN -------------
    attn_kernel = functools.partial(
        attention_ffn_kernel, num_heads=num_heads, tq=tq, tk=tk)

    def kv_index_map(b, qi, ki):
        # Clamp to the causal diagonal: tiles above it re-reference the
        # previous block index, so Pallas skips their DMA entirely.
        last = (qi * tq + tq - 1) // tk
        return (b, 0, jnp.minimum(ki, last), 0)

    # Constant-index weight blocks: fetched once, resident across the grid.
    full = lambda shape: pl.BlockSpec(shape, lambda b, qi, ki: (0, 0))

    attn_tile_bytes = (
        2 * tq * D * xsz                               # x tile + output tile
        + num_heads * tq * head_dim * csz              # Q tile
        + 2 * num_heads * tk * head_dim * csz)         # K + V tiles
    attn_weight_bytes = ((D * D + D * Hff + Hff * D) * csz
                         + (4 * D + Hff) * 4)          # biases + LN2 params
    attn_scratch_bytes = num_heads * tq * (head_dim + 2) * 4
    attn_vmem = _vmem_limit(2 * (attn_tile_bytes + attn_weight_bytes)
                            + attn_scratch_bytes)

    grid_spec = pltpu.PrefetchScalarGridSpec(
        num_scalar_prefetch=0,
        grid=(B, nq, nk),
        in_specs=[
            pl.BlockSpec((1, tq, D), lambda b, qi, ki: (b, qi, 0)),    # x (residual)
            pl.BlockSpec((1, num_heads, tq, head_dim),
                         lambda b, qi, ki: (b, 0, qi, 0)),             # Q
            pl.BlockSpec((1, num_heads, tk, head_dim), kv_index_map),  # K
            pl.BlockSpec((1, num_heads, tk, head_dim), kv_index_map),  # V
            full((D, D)), full((1, D)),                                # Wo, b_o
            full((1, D)), full((1, D)),                                # ln2 scale/shift
            full((D, Hff)), full((1, Hff)),                            # W_ff1, b_ff1
            full((Hff, D)), full((1, D)),                              # W_ff2, b_ff2
        ],
        out_specs=pl.BlockSpec((1, tq, D), lambda b, qi, ki: (b, qi, 0)),
        scratch_shapes=[
            pltpu.VMEM((num_heads, tq, 1), jnp.float32),          # running max
            pltpu.VMEM((num_heads, tq, 1), jnp.float32),          # running sum
            pltpu.VMEM((num_heads, tq, head_dim), jnp.float32),   # accumulator
        ],
    )

    return pl.pallas_call(
        attn_kernel,
        out_shape=jax.ShapeDtypeStruct((B, T, D), x.dtype),
        grid_spec=grid_spec,
        compiler_params=pltpu.CompilerParams(
            dimension_semantics=("parallel", "parallel", "arbitrary"),
            vmem_limit_bytes=attn_vmem),
    )(x, q_hbm, k_hbm, v_hbm,
      wcast(params["w_o"]), params["b_o"],
      params["ln2_scale"], params["ln2_shift"],
      wcast(params["w_ff1"]), params["b_ff1"],
      wcast(params["w_ff2"]), params["b_ff2"])


def reference_block(x, params, *, num_heads):
    """Pure-JAX reference mirroring the PyTorch forward (dropout = identity)."""
    B, T, D = x.shape
    hd = D // num_heads

    def ln(v, s, b):
        m = jnp.mean(v, axis=-1, keepdims=True)
        var = jnp.mean((v - m) ** 2, axis=-1, keepdims=True)
        return s * ((v - m) / jnp.sqrt(var + 1e-5)) + b

    shortcut = x
    h = ln(x, params["ln1_scale"][0], params["ln1_shift"][0])
    q = h @ params["w_q"]
    k = h @ params["w_k"]
    v = h @ params["w_v"]
    q = q.reshape(B, T, num_heads, hd).transpose(0, 2, 1, 3)
    k = k.reshape(B, T, num_heads, hd).transpose(0, 2, 1, 3)
    v = v.reshape(B, T, num_heads, hd).transpose(0, 2, 1, 3)
    scores = jnp.einsum("bhtd,bhsd->bhts", q, k)
    mask = jnp.triu(jnp.ones((T, T), dtype=bool), k=1)
    scores = jnp.where(mask, -jnp.inf, scores)
    w = jax.nn.softmax(scores / math.sqrt(hd), axis=-1)
    ctx = jnp.einsum("bhts,bhsd->bhtd", w, v).transpose(0, 2, 1, 3).reshape(B, T, D)
    attn = ctx @ params["w_o"] + params["b_o"][0]
    x = shortcut + attn

    shortcut = x
    h2 = ln(x, params["ln2_scale"][0], params["ln2_shift"][0])
    ff = h2 @ params["w_ff1"] + params["b_ff1"][0]
    c = math.sqrt(2.0 / math.pi)
    ff = 0.5 * ff * (1.0 + jnp.tanh(c * (ff + 0.044715 * ff ** 3)))
    ff = ff @ params["w_ff2"] + params["b_ff2"][0]
    return shortcut + ff


if __name__ == "__main__":
    # cfg: emb_dim=32, context_length=8, n_heads=4, drop_rate=0.0, qkv_bias=False
    B, T, D, NH = 2, 8, 32, 4
    Hff = 4 * D

    key = jax.random.PRNGKey(0)
    keys = jax.random.split(key, 12)
    s = 0.05
    params = {
        "w_q": jax.random.normal(keys[0], (D, D), jnp.float32) * s,
        "w_k": jax.random.normal(keys[1], (D, D), jnp.float32) * s,
        "w_v": jax.random.normal(keys[2], (D, D), jnp.float32) * s,
        "w_o": jax.random.normal(keys[3], (D, D), jnp.float32) * s,
        "b_o": jax.random.normal(keys[4], (1, D), jnp.float32) * s,
        "ln1_scale": jnp.ones((1, D), jnp.float32),
        "ln1_shift": jnp.zeros((1, D), jnp.float32),
        "ln2_scale": jnp.ones((1, D), jnp.float32),
        "ln2_shift": jnp.zeros((1, D), jnp.float32),
        "w_ff1": jax.random.normal(keys[5], (D, Hff), jnp.float32) * s,
        "b_ff1": jax.random.normal(keys[6], (1, Hff), jnp.float32) * s,
        "w_ff2": jax.random.normal(keys[7], (Hff, D), jnp.float32) * s,
        "b_ff2": jax.random.normal(keys[8], (1, D), jnp.float32) * s,
    }
    x = jax.random.normal(keys[9], (B, T, D), jnp.float32)

    ref = reference_block(x, params, num_heads=NH)

    # f32 MXU-input path (exact semantics; approx reciprocal/rsqrt -> mild tol).
    out = transformer_block(x, params, num_heads=NH)
    out = jax.block_until_ready(out)
    np.testing.assert_allclose(np.asarray(out), np.asarray(ref),
                               rtol=2e-3, atol=2e-3)

    # bf16 MXU-input path (recommended on all gens): f32 accumulation throughout.
    out_bf16 = transformer_block(x, params, num_heads=NH,
                                 compute_dtype=jnp.bfloat16)
    out_bf16 = jax.block_until_ready(out_bf16)
    np.testing.assert_allclose(np.asarray(out_bf16), np.asarray(ref),
                               rtol=5e-2, atol=5e-2)

    print("KERNEL_OK")
</pallas_src>

<mosaic_0001>
module attributes {stable_mosaic.version = 11 : i64} {
  func.func @qkv_projection_kernel(%arg0: i32, %arg1: i32, %arg2: memref<1x8x32xf32, #tpu.memory_space<vmem>>, %arg3: memref<1x32xf32, #tpu.memory_space<vmem>>, %arg4: memref<1x32xf32, #tpu.memory_space<vmem>>, %arg5: memref<32x32xf32, #tpu.memory_space<vmem>>, %arg6: memref<32x32xf32, #tpu.memory_space<vmem>>, %arg7: memref<32x32xf32, #tpu.memory_space<vmem>>, %arg8: memref<1x4x8x8xf32, #tpu.memory_space<vmem>>, %arg9: memref<1x4x8x8xf32, #tpu.memory_space<vmem>>, %arg10: memref<1x4x8x8xf32, #tpu.memory_space<vmem>>) attributes {dimension_semantics = [#tpu.dimension_semantics<parallel>, #tpu.dimension_semantics<parallel>], iteration_bounds = array<i64: 2, 1>, scalar_prefetch = 0 : i64, scratch_operands = 0 : i64, tpu.core_type = #tpu.core_type<tc>, window_params = [{transform_indices = @transform_0, window_bounds = array<i64: 1, 8, 32>}, {pipeline_mode = #tpu.pipeline_mode<synchronous>, transform_indices = @transform_1, window_bounds = array<i64: 1, 32>}, {pipeline_mode = #tpu.pipeline_mode<synchronous>, transform_indices = @transform_2, window_bounds = array<i64: 1, 32>}, {pipeline_mode = #tpu.pipeline_mode<synchronous>, transform_indices = @transform_3, window_bounds = array<i64: 32, 32>}, {pipeline_mode = #tpu.pipeline_mode<synchronous>, transform_indices = @transform_4, window_bounds = array<i64: 32, 32>}, {pipeline_mode = #tpu.pipeline_mode<synchronous>, transform_indices = @transform_5, window_bounds = array<i64: 32, 32>}, {transform_indices = @transform_6, window_bounds = array<i64: 1, 4, 8, 8>}, {transform_indices = @transform_7, window_bounds = array<i64: 1, 4, 8, 8>}, {transform_indices = @transform_8, window_bounds = array<i64: 1, 4, 8, 8>}]} {
    %c0 = arith.constant 0 : index
    %c0_0 = arith.constant 0 : index
    %c0_1 = arith.constant 0 : index
    %0 = vector.load %arg2[%c0, %c0_0, %c0_1] : memref<1x8x32xf32, #tpu.memory_space<vmem>>, vector<1x8x32xf32>
    %1 = vector.shape_cast %0 : vector<1x8x32xf32> to vector<8x32xf32>
    %c0_2 = arith.constant 0 : index
    %c0_3 = arith.constant 0 : index
    %2 = vector.load %arg3[%c0_2, %c0_3] : memref<1x32xf32, #tpu.memory_space<vmem>>, vector<1x32xf32>
    %3 = vector.shape_cast %2 : vector<1x32xf32> to vector<32xf32>
    %c0_4 = arith.constant 0 : index
    %c0_5 = arith.constant 0 : index
    %4 = vector.load %arg4[%c0_4, %c0_5] : memref<1x32xf32, #tpu.memory_space<vmem>>, vector<1x32xf32>
    %5 = vector.shape_cast %4 : vector<1x32xf32> to vector<32xf32>
    %cst = arith.constant dense<0.000000e+00> : vector<8xf32>
    %6 = vector.multi_reduction <add>, %1, %cst [1] : vector<8x32xf32> to vector<8xf32>
    %7 = vector.shape_cast %6 : vector<8xf32> to vector<8x1xf32>
    %cst_6 = arith.constant 3.200000e+01 : f32
    %8 = vector.broadcast %cst_6 : f32 to vector<8x1xf32>
    %9 = arith.divf %7, %8 : vector<8x1xf32>
    %10 = vector.broadcast %9 : vector<8x1xf32> to vector<8x32xf32>
    %11 = arith.subf %1, %10 : vector<8x32xf32>
    %12 = arith.mulf %11, %11 : vector<8x32xf32>
    %cst_7 = arith.constant dense<0.000000e+00> : vector<8xf32>
    %13 = vector.multi_reduction <add>, %12, %cst_7 [1] : vector<8x32xf32> to vector<8xf32>
    %14 = vector.shape_cast %13 : vector<8xf32> to vector<8x1xf32>
    %cst_8 = arith.constant 3.200000e+01 : f32
    %15 = vector.broadcast %cst_8 : f32 to vector<8x1xf32>
    %16 = arith.divf %14, %15 : vector<8x1xf32>
    %17 = vector.broadcast %9 : vector<8x1xf32> to vector<8x32xf32>
    %18 = arith.subf %1, %17 : vector<8x32xf32>
    %cst_9 = arith.constant 9.99999974E-6 : f32
    %19 = vector.broadcast %cst_9 : f32 to vector<8x1xf32>
    %20 = arith.addf %16, %19 : vector<8x1xf32>
    %21 = math.rsqrt %20 : vector<8x1xf32>
    %22 = vector.broadcast %21 : vector<8x1xf32> to vector<8x32xf32>
    %23 = arith.mulf %18, %22 : vector<8x32xf32>
    %24 = vector.shape_cast %3 : vector<32xf32> to vector<1x32xf32>
    %25 = vector.broadcast %24 : vector<1x32xf32> to vector<8x32xf32>
    %26 = arith.mulf %25, %23 : vector<8x32xf32>
    %27 = vector.shape_cast %5 : vector<32xf32> to vector<1x32xf32>
    %28 = vector.broadcast %27 : vector<1x32xf32> to vector<8x32xf32>
    %29 = arith.addf %26, %28 : vector<8x32xf32>
    %c0_10 = arith.constant 0 : index
    %c0_11 = arith.constant 0 : index
    %30 = vector.load %arg5[%c0_10, %c0_11] : memref<32x32xf32, #tpu.memory_space<vmem>>, vector<32x32xf32>
    %cst_12 = arith.constant dense<0.000000e+00> : vector<8x32xf32>
    %31 = tpu.matmul %29, %30, %cst_12 {dimension_numbers = #tpu.dot_dimension_numbers<[1], [0], [0], [1], [0, 0, 1, 1], [], []>} : vector<8x32xf32>, vector<32x32xf32>, vector<8x32xf32> -> vector<8x32xf32>
    %cst_13 = arith.constant 0.353553385 : f32
    %32 = vector.broadcast %cst_13 : f32 to vector<8x32xf32>
    %33 = arith.mulf %31, %32 : vector<8x32xf32>
    %c0_14 = arith.constant 0 : index
    %c0_15 = arith.constant 0 : index
    %34 = vector.load %arg6[%c0_14, %c0_15] : memref<32x32xf32, #tpu.memory_space<vmem>>, vector<32x32xf32>
    %cst_16 = arith.constant dense<0.000000e+00> : vector<8x32xf32>
    %35 = tpu.matmul %29, %34, %cst_16 {dimension_numbers = #tpu.dot_dimension_numbers<[1], [0], [0], [1], [0, 0, 1, 1], [], []>} : vector<8x32xf32>, vector<32x32xf32>, vector<8x32xf32> -> vector<8x32xf32>
    %c0_17 = arith.constant 0 : index
    %c0_18 = arith.constant 0 : index
    %36 = vector.load %arg7[%c0_17, %c0_18] : memref<32x32xf32, #tpu.memory_space<vmem>>, vector<32x32xf32>
    %cst_19 = arith.constant dense<0.000000e+00> : vector<8x32xf32>
    %37 = tpu.matmul %29, %36, %cst_19 {dimension_numbers = #tpu.dot_dimension_numbers<[1], [0], [0], [1], [0, 0, 1, 1], [], []>} : vector<8x32xf32>, vector<32x32xf32>, vector<8x32xf32> -> vector<8x32xf32>
    %38 = vector.extract_strided_slice %33 {offsets = [0, 0], sizes = [8, 8], strides = [1, 1]} : vector<8x32xf32> to vector<8x8xf32>
    %39 = vector.extract_strided_slice %33 {offsets = [0, 8], sizes = [8, 8], strides = [1, 1]} : vector<8x32xf32> to vector<8x8xf32>
    %40 = vector.extract_strided_slice %33 {offsets = [0, 16], sizes = [8, 8], strides = [1, 1]} : vector<8x32xf32> to vector<8x8xf32>
    %41 = vector.extract_strided_slice %33 {offsets = [0, 24], sizes = [8, 8], strides = [1, 1]} : vector<8x32xf32> to vector<8x8xf32>
    %42 = vector.shape_cast %38 : vector<8x8xf32> to vector<1x8x8xf32>
    %43 = vector.shape_cast %39 : vector<8x8xf32> to vector<1x8x8xf32>
    %44 = vector.shape_cast %40 : vector<8x8xf32> to vector<1x8x8xf32>
    %45 = vector.shape_cast %41 : vector<8x8xf32> to vector<1x8x8xf32>
    %46 = tpu.concatenate %42, %43, %44, %45 in 0 : vector<1x8x8xf32>, vector<1x8x8xf32>, vector<1x8x8xf32>, vector<1x8x8xf32> -> vector<4x8x8xf32>
    %c0_20 = arith.constant 0 : index
    %c0_21 = arith.constant 0 : index
    %c0_22 = arith.constant 0 : index
    %c0_23 = arith.constant 0 : index
    %47 = vector.load %arg8[%c0_20, %c0_21, %c0_22, %c0_23] : memref<1x4x8x8xf32, #tpu.memory_space<vmem>>, vector<1x4x8x8xf32>
    %48 = vector.shape_cast %47 : vector<1x4x8x8xf32> to vector<4x8x8xf32>
    %49 = vector.shape_cast %46 : vector<4x8x8xf32> to vector<1x4x8x8xf32>
    tpu.vector_store %arg8[%c0_20, %c0_21, %c0_22, %c0_23], %49 {strides = array<i32>} : memref<1x4x8x8xf32, #tpu.memory_space<vmem>>, vector<1x4x8x8xf32>,
    %50 = vector.extract_strided_slice %35 {offsets = [0, 0], sizes = [8, 8], strides = [1, 1]} : vector<8x32xf32> to vector<8x8xf32>
    %51 = vector.extract_strided_slice %35 {offsets = [0, 8], sizes = [8, 8], strides = [1, 1]} : vector<8x32xf32> to vector<8x8xf32>
    %52 = vector.extract_strided_slice %35 {offsets = [0, 16], sizes = [8, 8], strides = [1, 1]} : vector<8x32xf32> to vector<8x8xf32>
    %53 = vector.extract_strided_slice %35 {offsets = [0, 24], sizes = [8, 8], strides = [1, 1]} : vector<8x32xf32> to vector<8x8xf32>
    %54 = vector.shape_cast %50 : vector<8x8xf32> to vector<1x8x8xf32>
    %55 = vector.shape_cast %51 : vector<8x8xf32> to vector<1x8x8xf32>
    %56 = vector.shape_cast %52 : vector<8x8xf32> to vector<1x8x8xf32>
    %57 = vector.shape_cast %53 : vector<8x8xf32> to vector<1x8x8xf32>
    %58 = tpu.concatenate %54, %55, %56, %57 in 0 : vector<1x8x8xf32>, vector<1x8x8xf32>, vector<1x8x8xf32>, vector<1x8x8xf32> -> vector<4x8x8xf32>
    %c0_24 = arith.constant 0 : index
    %c0_25 = arith.constant 0 : index
    %c0_26 = arith.constant 0 : index
    %c0_27 = arith.constant 0 : index
    %59 = vector.load %arg9[%c0_24, %c0_25, %c0_26, %c0_27] : memref<1x4x8x8xf32, #tpu.memory_space<vmem>>, vector<1x4x8x8xf32>
    %60 = vector.shape_cast %59 : vector<1x4x8x8xf32> to vector<4x8x8xf32>
    %61 = vector.shape_cast %58 : vector<4x8x8xf32> to vector<1x4x8x8xf32>
    tpu.vector_store %arg9[%c0_24, %c0_25, %c0_26, %c0_27], %61 {strides = array<i32>} : memref<1x4x8x8xf32, #tpu.memory_space<vmem>>, vector<1x4x8x8xf32>,
    %62 = vector.extract_strided_slice %37 {offsets = [0, 0], sizes = [8, 8], strides = [1, 1]} : vector<8x32xf32> to vector<8x8xf32>
    %63 = vector.extract_strided_slice %37 {offsets = [0, 8], sizes = [8, 8], strides = [1, 1]} : vector<8x32xf32> to vector<8x8xf32>
    %64 = vector.extract_strided_slice %37 {offsets = [0, 16], sizes = [8, 8], strides = [1, 1]} : vector<8x32xf32> to vector<8x8xf32>
    %65 = vector.extract_strided_slice %37 {offsets = [0, 24], sizes = [8, 8], strides = [1, 1]} : vector<8x32xf32> to vector<8x8xf32>
    %66 = vector.shape_cast %62 : vector<8x8xf32> to vector<1x8x8xf32>
    %67 = vector.shape_cast %63 : vector<8x8xf32> to vector<1x8x8xf32>
    %68 = vector.shape_cast %64 : vector<8x8xf32> to vector<1x8x8xf32>
    %69 = vector.shape_cast %65 : vector<8x8xf32> to vector<1x8x8xf32>
    %70 = tpu.concatenate %66, %67, %68, %69 in 0 : vector<1x8x8xf32>, vector<1x8x8xf32>, vector<1x8x8xf32>, vector<1x8x8xf32> -> vector<4x8x8xf32>
    %c0_28 = arith.constant 0 : index
    %c0_29 = arith.constant 0 : index
    %c0_30 = arith.constant 0 : index
    %c0_31 = arith.constant 0 : index
    %71 = vector.load %arg10[%c0_28, %c0_29, %c0_30, %c0_31] : memref<1x4x8x8xf32, #tpu.memory_space<vmem>>, vector<1x4x8x8xf32>
    %72 = vector.shape_cast %71 : vector<1x4x8x8xf32> to vector<4x8x8xf32>
    %73 = vector.shape_cast %70 : vector<4x8x8xf32> to vector<1x4x8x8xf32>
    tpu.vector_store %arg10[%c0_28, %c0_29, %c0_30, %c0_31], %73 {strides = array<i32>} : memref<1x4x8x8xf32, #tpu.memory_space<vmem>>, vector<1x4x8x8xf32>,
    return
  }
  func.func @transform_0(%arg0: i32, %arg1: i32) -> (i32, i32, i32) {
    %c0_i32 = arith.constant 0 : i32
    %c0_i32_0 = arith.constant 0 : i32
    return %arg0, %arg1, %c0_i32 : i32, i32, i32
  }
  func.func @transform_1(%arg0: i32, %arg1: i32) -> (i32, i32) {
    %c0_i32 = arith.constant 0 : i32
    %c0_i32_0 = arith.constant 0 : i32
    %c0_i32_1 = arith.constant 0 : i32
    return %c0_i32, %c0_i32_0 : i32, i32
  }
  func.func @transform_2(%arg0: i32, %arg1: i32) -> (i32, i32) {
    %c0_i32 = arith.constant 0 : i32
    %c0_i32_0 = arith.constant 0 : i32
    %c0_i32_1 = arith.constant 0 : i32
    return %c0_i32, %c0_i32_0 : i32, i32
  }
  func.func @transform_3(%arg0: i32, %arg1: i32) -> (i32, i32) {
    %c0_i32 = arith.constant 0 : i32
    %c0_i32_0 = arith.constant 0 : i32
    %c0_i32_1 = arith.constant 0 : i32
    return %c0_i32, %c0_i32_0 : i32, i32
  }
  func.func @transform_4(%arg0: i32, %arg1: i32) -> (i32, i32) {
    %c0_i32 = arith.constant 0 : i32
    %c0_i32_0 = arith.constant 0 : i32
    %c0_i32_1 = arith.constant 0 : i32
    return %c0_i32, %c0_i32_0 : i32, i32
  }
  func.func @transform_5(%arg0: i32, %arg1: i32) -> (i32, i32) {
    %c0_i32 = arith.constant 0 : i32
    %c0_i32_0 = arith.constant 0 : i32
    %c0_i32_1 = arith.constant 0 : i32
    return %c0_i32, %c0_i32_0 : i32, i32
  }
  func.func @transform_6(%arg0: i32, %arg1: i32) -> (i32, i32, i32, i32) {
    %c0_i32 = arith.constant 0 : i32
    %c0_i32_0 = arith.constant 0 : i32
    %c0_i32_1 = arith.constant 0 : i32
    return %arg0, %c0_i32, %arg1, %c0_i32_0 : i32, i32, i32, i32
  }
  func.func @transform_7(%arg0: i32, %arg1: i32) -> (i32, i32, i32, i32) {
    %c0_i32 = arith.constant 0 : i32
    %c0_i32_0 = arith.constant 0 : i32
    %c0_i32_1 = arith.constant 0 : i32
    return %arg0, %c0_i32, %arg1, %c0_i32_0 : i32, i32, i32, i32
  }
  func.func @transform_8(%arg0: i32, %arg1: i32) -> (i32, i32, i32, i32) {
    %c0_i32 = arith.constant 0 : i32
    %c0_i32_0 = arith.constant 0 : i32
    %c0_i32_1 = arith.constant 0 : i32
    return %arg0, %c0_i32, %arg1, %c0_i32_0 : i32, i32, i32, i32
  }
}

</mosaic_0001>

<bundles_post_ra>
// kernel: tpu_custom_call.1
= control target key start
LH: loop header
LB: loop body
LE: loop exit
PB: predicated region body
PF: predicated region fallthrough
CT: control target
= control target key end

     0   :  { %s1896_s0 = inlined_call_operand.hbm [shape: f32[2,8,32], index: 0, kind: input, shape index: {}]   ;;  %s1897_s1 = inlined_call_operand.vmem [shape: f32[1,32], index: 1, kind: input, shape index: {}]   ;;  %s1898_s2 = inlined_call_operand.vmem [shape: f32[1,32], index: 2, kind: input, shape index: {}]   ;;  %s1899_s3 = inlined_call_operand.hbm [shape: f32[32,32], index: 3, kind: input, shape index: {}]   ;;  %s1900_s4 = inlined_call_operand.hbm [shape: f32[32,32], index: 4, kind: input, shape index: {}]   ;;  %s1901_s5 = inlined_call_operand.hbm [shape: f32[32,32], index: 5, kind: input, shape index: {}]   ;;  %s1902_s6 = inlined_call_operand.hbm [shape: f32[2,4,8,8], index: 6, kind: output, shape index: {0}]   ;;  %s1903_s7 = inlined_call_operand.hbm [shape: f32[2,4,8,8], index: 7, kind: output, shape index: {1}]   ;;  %s1904_s8 = inlined_call_operand.hbm [shape: f32[2,4,8,8], index: 8, kind: output, shape index: {2}]  }
   0x1   :  { %1915 = sst [smem:[#allocation21_spill]] %s1902_s6 }
   0x2   :  { %1916 = sst [smem:[#allocation22_spill]] %s1904_s8 }
   0x3   :  { %14 = vsyncpa [#allocation3], 0 }
   0x4   :  { %16 = vsyncpa [#allocation3 + $0x1], 0 }
   0x5   :  { %17 = vsyncpa [#allocation6], 0 }
   0x6   :  { %18 = vsyncpa [#allocation9], 0 }
   0x7   :  { %19 = vsyncpa [#allocation4], 0 }
   0x8   :  { %21 = vsyncpa [#allocation4 + $0x1], 0 }
   0x9   :  { %22 = vsyncpa [#allocation12], 0 }
   0xa   :  { %24 = vsyncpa [#allocation12 + $0x1], 0  ;;  %s1487_s27 = smov 0   ;;  %s1489_s28 = smov 0  }
   0xb   :  { %s1491_s29 = smov 0   ;;  %s1493_s30 = smov 0  }
   0xc   :  { %s1495_s9 = smov 0   ;;  %s1497_s10 = smov 0  }
   0xd LB: > { %1917 = sst [smem:[#allocation19_spill]] %s1403_s27  ;;  %s1518_s11 = sadd.s32 4294967295, %s1423_s10   ;;  %s1423_s10 = sphi %s1497_s10, %s30_s10   ;;  %s1419_s9 = sphi %s1495_s9, %s1946_s9   ;;  %s1415_s30 = sphi %s1493_s30, %s1945_s30   ;;  %s1411_s29 = sphi %s1491_s29, %s1944_s29   ;;  %s1407_s28 = sphi %s1489_s28, %s1943_s28   ;;  %s1403_s27 = sphi %s1487_s27, %s1942_s27  }
   0xe   : > { %s1905_s12 = sadd.s32 4294967294, %s1423_s10   ;;  %p64_p0 = scmp.ne.s32.totalorder %s1407_s28, %s1403_s27 }
   0xf   : > { %p1906_p1 = scmp.eq.s32.totalorder %s1518_s11, 0  ;;  %p201_p3 = scmp.eq.s32.totalorder %s1905_s12, 1 }
  0x10   : > { %p944_p5 = scmp.ge.s32.totalorder %s1423_s10, 1  ;;  %p264_p7 = scmp.lt.s32.totalorder %s1423_s10, 3 }
  0x11   : > { %p1529_p4 = por %p1906_p1, %p64_p0  ;;  %p1534_p6 = por %p201_p3, %p64_p0 }
  0x12   : > { %p1539_p8 = pnand %p944_p5, %p264_p7  ;;  %s1425_s16 = smov [#allocation5]  }
  0x13   : > { %s1918_s13 = scalar_select %p1529_p4, 1, 0 }
  0x14   : > { %s1919_s14 = scalar_select %p1534_p6, 1, 0 }
  0x15   : > { %s1921_s15 = scalar_select %p1539_p8, 1, 0 }
  0x16   : > { %1920 = sst [smem:[#allocation20_spill]] %s1919_s14  ;;  %s282_s17 = sshll.u32 %s1425_s16, 4  ;;  %s1543_s17 = int_to_ptr.vmem [resolvable:$true] %s282_s17 }
  0x17   : > { %p1064_p9 = pneg %p1539_p8  ;;  %s1426_s19 = smov [#allocation7]  }
  0x18   : > { %s295_s20 = sshll.u32 %s1426_s19, 4  ;;  %s1427_s21 = smov [#allocation8]   ;;  %s1554_s20 = int_to_ptr.vmem [resolvable:$true] %s295_s20 }
  0x19   : > { %p1550_p11 = pnand %p1064_p9, %p1906_p1  ;;  %s1556_s22 = sshll.u32 %s1427_s21, 4  ;;  %s309_s22 = int_to_ptr.vmem [resolvable:$true] %s1556_s22 }
  0x1a   : > { %s1159_s25 = scalar_lea.hbm %s1899_s3, 512 }
  0x1b   : > { %p1160_p12 = scmp.ne.s32.totalorder %s1899_s3, %s1159_s25  ;;  %p1566_p13 = pneg %p1550_p11 }
  0x1c   : > { %p1166_p5 = scmp.lt.u32.totalorder %s1159_s25, %s1899_s3 }
  0x1d   : > { %p1162_p0 = pnand %p1566_p13, %p1160_p12 }
  0x1f   : > { %p1163_p3 = pneg %p1162_p0 }
  0x21   : > { %p1168_p7 = pnand %p1166_p5, %p1163_p3 }
  0x23   : > { %1171 = shalt.err (!%p1168_p7)
}
  0x24   : > { %s1172_s23 = scalar_lea.vmem %s1543_s17, 512  ;;  %p1180_p2 = scmp.lt.s32.totalorder %s1543_s17, %s1543_s17 }
  0x25   : > { %p1173_p9 = scmp.ne.s32.totalorder %s1543_s17, %s1172_s23  ;;  %p1181_p6 = scmp.lt.s32.totalorder %s1172_s23, %s1172_s23 }
  0x27   : > { %p1175_p10 = pnand %p1173_p9, %p1566_p13  ;;  %p1182_p12 = por %p1181_p6, %p1180_p2 }
  0x29   : > { %p1176_p1 = pneg %p1175_p10 }
  0x2b   : > { %p1183_p0 = pnand %p1182_p12, %p1176_p1 }
  0x2d   : > { %1186 = shalt.err (!%p1183_p0)
}
  0x2e   : > { %s1428_s24 = smov 128   ;;  %s1429_s25 = smov 8  }
  0x2f   : > { %1067 = dma.hbm_to_vmem [thread:$0]  (!%p1550_p11), %s1899_s3, 512, %s1543_s17, [#allocation6], %s1428_s24, %s1428_s24, %s1429_s25  }
  0x30   : > { %s1187_s23 = scalar_lea.hbm %s1900_s4, 512 }
  0x31   : > { %p1188_p1 = scmp.ne.s32.totalorder %s1900_s4, %s1187_s23  ;;  %p1194_p10 = scmp.lt.u32.totalorder %s1187_s23, %s1900_s4 }
  0x33   : > { %p1190_p2 = pnand %p1188_p1, %p1566_p13 }
  0x35   : > { %p1191_p6 = pneg %p1190_p2 }
  0x37   : > { %p1196_p3 = pnand %p1194_p10, %p1191_p6 }
  0x39   : > { %1199 = shalt.err (!%p1196_p3)
}
  0x3a   : > { %s1200_s17 = scalar_lea.vmem %s1554_s20, 512  ;;  %p1208_p12 = scmp.lt.s32.totalorder %s1554_s20, %s1554_s20 }
  0x3b   : > { %p1201_p5 = scmp.ne.s32.totalorder %s1554_s20, %s1200_s17  ;;  %p1209_p0 = scmp.lt.s32.totalorder %s1200_s17, %s1200_s17 }
  0x3d   : > { %p1203_p7 = pnand %p1201_p5, %p1566_p13  ;;  %p1210_p1 = por %p1209_p0, %p1208_p12 }
  0x3f   : > { %p1204_p9 = pneg %p1203_p7 }
  0x41   : > { %p1211_p2 = pnand %p1210_p1, %p1204_p9 }
  0x43   : > { %1214 = shalt.err (!%p1211_p2)
}
  0x44   : > { %1070 = dma.hbm_to_vmem [thread:$0]  (!%p1550_p11), %s1900_s4, 512, %s1554_s20, [#allocation6], %s1428_s24, %s1428_s24, %s1429_s25  }
  0x45   : > { %s1215_s26 = scalar_lea.hbm %s1901_s5, 512 }
  0x46   : > { %p1216_p6 = scmp.ne.s32.totalorder %s1901_s5, %s1215_s26  ;;  %p1222_p5 = scmp.lt.u32.totalorder %s1215_s26, %s1901_s5 }
  0x48   : > { %p1218_p10 = pnand %p1216_p6, %p1566_p13 }
  0x4a   : > { %p1219_p3 = pneg %p1218_p10 }
  0x4c   : > { %p1224_p7 = pnand %p1222_p5, %p1219_p3 }
  0x4e   : > { %1227 = shalt.err (!%p1224_p7)
}
  0x4f   : > { %s1228_s17 = scalar_lea.vmem %s309_s22, 512  ;;  %p1236_p1 = scmp.lt.s32.totalorder %s309_s22, %s309_s22 }
  0x50   : > { %p1229_p9 = scmp.ne.s32.totalorder %s309_s22, %s1228_s17  ;;  %p1237_p2 = scmp.lt.s32.totalorder %s1228_s17, %s1228_s17 }
  0x52   : > { %p1231_p12 = pnand %p1229_p9, %p1566_p13  ;;  %p1238_p4 = por %p1237_p2, %p1236_p1 }
  0x54   : > { %p1232_p0 = pneg %p1231_p12 }
  0x56   : > { %p1239_p8 = pnand %p1238_p4, %p1232_p0 }
  0x58   : > { %1242 = shalt.err (!%p1239_p8)
}
  0x59   : > { %1073 = dma.hbm_to_vmem [thread:$0]  (!%p1550_p11), %s1901_s5, 512, %s309_s22, [#allocation9], %s1428_s24, %s1428_s24, %s1429_s25  }
  0x5a   : > { %s51_s12 = sadd.s32 1, %s1411_s29  ;;  %s42_s18 = sadd.s32 1, %s1419_s9 }
  0x5b   : > { %p58_p4 = scmp.ne.s32.totalorder %s1411_s29, %s1407_s28  ;;  %p44_p8 = scmp.ge.s32.totalorder %s42_s18, 2 }
  0x5c   : > { %p59_p13 = scmp.eq.s32.totalorder %s1423_s10, 0  ;;  %p1924_p6 = scmp.eq.s32.totalorder %s1518_s11, 1 }
  0x5d   : > { %p1091_p3 = scmp.lt.s32.totalorder %s1423_s10, 2  ;;  %s1948_s18 = smov (%p44_p8, %s42_s18), 0 }
  0x5e   : > { %p1645_p10 = por %p1924_p6, %p58_p4  ;;  %p60_p5 = por %p59_p13, %p58_p4 }
  0x5f   : > { %s322_s27 = sand.u32 1, %s1411_s29   ;;  %s46_s14 = ssub.s32 %s1419_s9, %s1948_s18 }
  0x60   : > { %p49_p7 = scmp.eq.s32.totalorder %s46_s14, 0  ;;  %s949_s22 = sshll.u32 %s322_s27, 3 }
  0x61   : > { %s950_s24 = sshll.u32 %s1419_s9, 7  ;;  %s326_s21 = scalar_lea.vmem [#allocation2], %s949_s22 }
  0x62   : > { %s1657_s25 = scalar_select %p49_p7, %s1411_s29, %s51_s12  }
  0x63   : > { %s1662_s19 = scalar_lea.hbm %s1896_s0, %s950_s24  ;;  %s334_s23 = sshll.u32 %s326_s21, 4  ;;  %s1664_s23 = int_to_ptr.vmem [resolvable:$true] %s334_s23 }
  0x64   : > { %p1668_p11 = pnand %p1091_p3, %p60_p5  ;;  %s323_s20 = scalar_lea.sflag [#allocation3], %s322_s27 }
  0x65   : > { %s1243_s6 = scalar_lea.hbm %s1662_s19, 128  ;;  %s1248_s22 = scalar_lea.hbm %s1896_s0, 256 }
  0x66   : > { %p1244_p9 = scmp.ne.s32.totalorder %s1662_s19, %s1243_s6  ;;  %p1245_p12 = pneg %p1668_p11 }
  0x67   : > { %p1249_p2 = scmp.lt.u32.totalorder %s1662_s19, %s1896_s0  ;;  %p1250_p4 = scmp.lt.u32.totalorder %s1248_s22, %s1243_s6 }
  0x68   : > { %p1246_p0 = pnand %p1245_p12, %p1244_p9  ;;  %p1252_p13 = scmp.lt.u32.totalorder %s1243_s6, %s1662_s19 }
  0x69   : > { %p1251_p8 = por %p1250_p4, %p1249_p2 }
  0x6a   : > { %p1247_p1 = pneg %p1246_p0 }
  0x6b   : > { %p1253_p6 = por %p1252_p13, %p1251_p8 }
  0x6d   : > { %p1254_p3 = pnand %p1253_p6, %p1247_p1 }
  0x6f   : > { %1257 = shalt.err (!%p1254_p3)
}
  0x70   : > { %s1258_s27 = scalar_lea.vmem %s1664_s23, 128  ;;  %s1430_s16 = smov [#allocation2]  }
  0x71   : > { %p1259_p5 = scmp.ne.s32.totalorder %s1664_s23, %s1258_s27  ;;  %s1263_s21 = sshll.u32 %s1430_s16, 4  ;;  %s1264_s21 = int_to_ptr.vmem [resolvable:$false] %s1263_s21 }
  0x72   : > { %s1265_s12 = scalar_lea.vmem %s1264_s21, 256  ;;  %p1266_p0 = scmp.lt.s32.totalorder %s1664_s23, %s1264_s21 }
  0x73   : > { %p1261_p7 = pnand %p1259_p5, %p1245_p12  ;;  %p1267_p2 = scmp.lt.s32.totalorder %s1265_s12, %s1258_s27 }
  0x75   : > { %p1262_p9 = pneg %p1261_p7  ;;  %p1268_p4 = por %p1267_p2, %p1266_p0 }
  0x77   : > { %p1269_p8 = pnand %p1268_p4, %p1262_p9 }
  0x79   : > { %1272 = shalt.err (!%p1269_p8)
}
  0x7a   : > { %1077 = dma.hbm_to_vmem [thread:$0]  (!%p1668_p11), %s1662_s19, 128, %s1664_s23, %s323_s20  }
  0x7b   : > { %p1927_p1 = scmp.ne.s32.totalorder %s1921_s15, 0 }
  0x7c   : > { %s1700_s6 = sand.u32 (!%p1927_p1), 1, %s1407_s28   ;;  %p1928_p12 = scmp.ne.s32.totalorder (!%p1927_p1), %s1918_s13, 0 }
  0x7d   : > { %343 = sbr.rel (%p1927_p1) target bundleno = 848 (0x350), region = 44  ;;  %s952_s14 = sshll.u32 (!%p1927_p1), %s1700_s6, 3 }
  0x7e   : > { %s346_s22 = scalar_lea.sflag (!%p1927_p1), [#allocation3], %s1700_s6  ;;  %s349_s24 = scalar_lea.vmem (!%p1927_p1), [#allocation2], %s952_s14 }
  0x84   : > { %1382 = dma.done.wait (%p1928_p12), %s346_s22, 128  }
  0x85   : > { %1384 = vsyncadd (%p1928_p12), %s346_s22, 4294967168  ;;  %p1929_p13 = scmp.eq.s32.totalorder %s1518_s11, 0 }
  0x87   : > { %1386 = dma.done.wait (%p1929_p13), [#allocation6], 1024   ;;  %p1930_p11 = pmov %p1929_p13 }
  0x89   : > { %1388 = vsyncadd (%p1930_p11), [#allocation6], 4294966272  ;;  %p1931_p6 = pmov %p1930_p11 }
  0x8b   : > { %1390 = dma.done.wait (%p1931_p6), [#allocation9], 512   ;;  %p1932_p3 = pmov %p1931_p6 }
  0x8c   : > { %vm407_vm0 = vcmask 261120   ;;  %v404_v0 = vld [vmem:[%s349_s24] sm:$0xff]  ;;  %v436_v7 = vld [vmem:[#allocation5] sm:$0xff]  ;;  %v437_v8 = vld [vmem:[#allocation5 + $0x8] sm:$0xff]  ;;  %v1431_v10 = vmov 0.0|0.0   ;;  %vm1432_vm1 = vmmov 0  }
  0x8d   : > { %1392 = vsyncadd (%p1932_p3), [#allocation9], 4294966784  ;;  %v408_v1 = vsel %vm407_vm0, %v404_v0, 0.0  ;;  %v514_v9 = vld [vmem:[#allocation7] sm:$0xff]  ;;  %1026 = vmatprep.subr.bf16.mxu0 %v1431_v10  ;;  %v1027_v11 = vpack.c.bf16 %v437_v8, %v436_v7  ;;  %1032 = vmatprep.subr.bf16.mxu1 %v1431_v10  ;;  %v515_v12 = vld [vmem:[#allocation7 + $0x8] sm:$0xff]  ;;  %v1433_v18 = vmov 0.0  }
  0x8e   : > { %409 = vadd.xlane.f32.xlu0 %v408_v1  ;;  %v438_v13 = vld [vmem:[#allocation5 + $0x10] sm:$0xff]  ;;  %v439_v14 = vld [vmem:[#allocation5 + $0x18] sm:$0xff]  ;;  %v1033_v15 = vpack.c.bf16 %v515_v12, %v514_v9  ;;  %1001 = vmatprep.mubr.msk.f32.mxu0 %vm1432_vm1, %v1433_v18  ;;  %v588_v27 = vld [vmem:[#allocation8] sm:$0xff]  ;;  %s956_s17 = sshll.u32 %s1700_s6, 5  ;;  %vm672_vm2 = vcmask 64512   ;;  %s1434_s26 = smov 104  }
  0x8f   : > { %v516_v16 = vld [vmem:[#allocation7 + $0x10] sm:$0xff]  ;;  %v517_v17 = vld [vmem:[#allocation7 + $0x18] sm:$0xff]  ;;  %1012 = vmatprep.mubr.msk.f32.mxu1 %vm1432_vm1, %v1433_v18  ;;  %1028 = vmatpush3.bf16.msra.mxu0 %v1027_v11  ;;  %v1030_v19 = vpack.c.bf16 %v439_v14, %v438_v13  ;;  %v589_v28 = vld [vmem:[#allocation8 + $0x8] sm:$0xff]  ;;  %s1731_s20 = scalar_lea.vmem [#allocation11], %s956_s17  ;;  %s1435_s27 = smov 120  }
  0x90   : > { %1034 = vmatpush3.bf16.msra.mxu1 %v1033_v15  ;;  %1029 = vmatprep.subr.bf16.mxu0 %v1431_v10  ;;  %v1036_v20 = vpack.c.bf16 %v517_v17, %v516_v16  ;;  %v959_v25 = vld [vmem:[%s1897_s1] ss:$0 sm:$0xff]  ;;  %v1039_v31 = vpack.c.bf16 %v589_v28, %v588_v27  ;;  %v591_v34 = vld [vmem:[#allocation8 + $0x18] sm:$0xff]  ;;  %s1735_s16 = scalar_lea.vmem [#allocation10], %s956_s17  ;;  %s1436_s21 = smov 112  }
  0x91   : > { %1035 = vmatprep.subr.bf16.mxu1 %v1431_v10  ;;  %v960_v29 = vld [vmem:[%s1898_s2] ss:$0 sm:$0xff]  ;;  %s1739_s12 = scalar_lea.vmem [#allocation13], %s956_s17  ;;  %s747_s14 = sshll.u32 %s1731_s20, 4  ;;  %s1748_s14 = int_to_ptr.vmem [resolvable:$true] %s747_s14 }
  0x92   : > { %v590_v33 = vld [vmem:[#allocation8 + $0x10] sm:$0xff]  ;;  %s710_s22 = sand.u32 1, %s1518_s11   ;;  %s1746_s24 = sshll.u32 %s1415_s30, 9 }
  0x93   : > { %1031 = vmatpush3.bf16.msra.mxu0 %v1030_v19  ;;  %v1042_v35 = vpack.c.bf16 %v591_v34, %v590_v33  ;;  %s1758_s19 = scalar_lea.hbm %s1903_s7, %s1746_s24  ;;  %s1762_s30 = scalar_lea.sflag [#allocation12], %s710_s22 }
  0x94   : > { %1037 = vmatpush3.bf16.msra.mxu1 %v1036_v20  ;;  %1038 = vmatprep.subr.bf16.mxu0 %v1431_v10  ;;  %s1273_s11 = scalar_lea.vmem %s1748_s14, 512  ;;  %s1437_s23 = smov [#allocation11]  }
  0x95   : > { %p1274_p5 = scmp.ne.s32.totalorder %s1748_s14, %s1273_s11  ;;  %s1277_s17 = sshll.u32 %s1437_s23, 4  ;;  %s1278_s17 = int_to_ptr.vmem [resolvable:$false] %s1277_s17 }
  0x96   : > { %p1280_p0 = scmp.lt.s32.totalorder %s1748_s14, %s1278_s17 }
  0x97   : > { %p1275_p7 = pnand %p1274_p5, %p1645_p10 }
  0x99   : > { %p1276_p9 = pneg %p1275_p7 }
 0x11b   : > { %v410_v2 = vpop.xlane.xlu0 %409 }
 0x11c   : > { %v412_v3 = vmul.f32 0.03125, %v410_v2 }
 0x11e   : > { %v413_v4 = vsub.f32 %v404_v0, %v412_v3 }
 0x120   : > { %v414_v5 = vmul.f32 %v413_v4, %v413_v4 }
 0x122   : > { %v415_v6 = vsel %vm407_vm0, %v414_v5, 0.0 }
 0x123   : > { %416 = vadd.xlane.f32.xlu0 %v415_v6 }
 0x1b0   : > { %v417_v21 = vpop.xlane.xlu0 %416 }
 0x1b1   : > { %v418_v22 = vmul.f32 0.03125, %v417_v21 }
 0x1b3   : > { %v419_v23 = vadd.f32 1e-05, %v418_v22 }
 0x1b5   : > { %1157 = vrsqrt.f32 %v419_v23 }
 0x1bf   : > { %v1158_v24 = vpop.eup %1157 }
 0x1c0   : > { %v421_v26 = vmul.f32 %v1158_v24, %v413_v4 }
 0x1c2   : > { %v428_v30 = vmul.f32 %v959_v25, %v421_v26 }
 0x1c4   : > { %v435_v32 = vadd.f32 %v960_v29, %v428_v30 }
 0x1c6   : > { %1002 = vmatmul.mubr.msk.f32.vlgmr.msra.gmra.mrb[0].mxu0 %vm407_vm0, %v435_v32  ;;  %1013 = vmatmul.mubr.msk.f32.vlgmr.msra.gmra.mrb[0].mxu1 %vm407_vm0, %v435_v32 }
 0x1c7   : > { %1040 = vmatpush3.bf16.msra.mxu0 %v1039_v31  ;;  %1023 = vmatprep.mubr.msk.f32.mxu0 %vm1432_vm1, %v1433_v18 }
 0x1c8   : > { %1041 = vmatprep.subr.bf16.mxu0 %v1431_v10 }
 0x1cb   : > { %1043 = vmatpush3.bf16.msra.mxu0 %v1042_v35 }
 0x1ce   : > { %1024 = vmatmul.mubr.msk.f32.vlgmr.msra.gmra.mrb[2].mxu0 %vm407_vm0, %v435_v32 }
 0x299   : > { %v509_v36 = vpop.f32.mrb[0].mxu0  ;;  %v584_v37 = vpop.f32.mrb[0].mxu1 }
 0x29a   : > { %v513_v38 = vmul.f32 0.35355338, %v509_v36  ;;  %687 = vst.msk [vmem:[%s1731_s20] sm:$0xff] %vm672_vm2, %v584_v37  ;;  %684 = vrot.lane.b32.xlu0 %v584_v37, %s1434_s26  ;;  %678 = vrot.lane.b32.xlu1 %v584_v37, %s1435_s27  ;;  %v1003_v39 = vpop.f32.mrb[1].mxu0  ;;  %v1014_v40 = vpop.f32.mrb[1].mxu1 }
 0x29c   : > { %673 = vst.msk [vmem:[%s1735_s16] sm:$0xff] %vm672_vm2, %v513_v38 }
 0x29e   : > { %681 = vrot.lane.b32.xlu1 %v584_v37, %s1436_s21 }
 0x2a1   : > { %v658_v41 = vpop.f32.mrb[2].mxu0 }
 0x2a2   : > { %701 = vst.msk [vmem:[%s1739_s12] sm:$0xff] %vm672_vm2, %v658_v41  ;;  %v1025_v42 = vpop.f32.mrb[3].mxu0  ;;  %663 = vrot.lane.b32.xlu1 %v513_v38, %s1435_s27 }
 0x2a6   : > { %666 = vrot.lane.b32.xlu1 %v513_v38, %s1436_s21 }
 0x2aa   : > { %669 = vrot.lane.b32.xlu1 %v513_v38, %s1434_s26 }
 0x2ae   : > { %692 = vrot.lane.b32.xlu1 %v658_v41, %s1435_s27 }
 0x2b2   : > { %695 = vrot.lane.b32.xlu1 %v658_v41, %s1436_s21 }
 0x2b6   : > { %698 = vrot.lane.b32.xlu1 %v658_v41, %s1434_s26  ;;  %s1279_s26 = scalar_lea.vmem %s1278_s17, 1024 }
 0x2b7   : > { %p1281_p2 = scmp.lt.s32.totalorder %s1279_s26, %s1273_s11 }
 0x2b9   : > { %p1282_p4 = por %p1281_p2, %p1280_p0 }
 0x2bb   : > { %p1283_p8 = pnand %p1282_p4, %p1276_p9 }
 0x30c   : > { %v685_v43 = vpop.permute.xlu0 %684  ;;  %v679_v44 = vpop.permute.xlu1 %678 }
 0x30d   : > { %690 = vst.msk [vmem:[%s1731_s20 + $0x18] sm:$0xff] %vm672_vm2, %v685_v43  ;;  %688 = vst.msk [vmem:[%s1731_s20 + $0x8] sm:$0xff] %vm672_vm2, %v679_v44 }
 0x310   : > { %v682_v45 = vpop.permute.xlu1 %681 }
 0x311   : > { %689 = vst.msk [vmem:[%s1731_s20 + $0x10] sm:$0xff] %vm672_vm2, %v682_v45 }
 0x312   : > { %1286 = shalt.err (!%p1283_p8)
}
 0x313   : > { %s1287_s20 = scalar_lea.hbm %s1758_s19, 512  ;;  %s1291_s22 = scalar_lea.hbm %s1903_s7, 1024 }
 0x314   : > { %p1288_p1 = scmp.ne.s32.totalorder %s1758_s19, %s1287_s20  ;;  %p1292_p11 = scmp.lt.u32.totalorder %s1758_s19, %s1903_s7 }
 0x315   : > { %p1293_p6 = scmp.lt.u32.totalorder %s1291_s22, %s1287_s20  ;;  %p1295_p5 = scmp.lt.u32.totalorder %s1287_s20, %s1758_s19 }
 0x316   : > { %p1289_p12 = pnand %p1288_p1, %p1645_p10 }
 0x317   : > { %p1294_p3 = por %p1293_p6, %p1292_p11 }
 0x318   : > { %p1290_p13 = pneg %p1289_p12 }
 0x319   : > { %p1296_p7 = por %p1295_p5, %p1294_p3 }
 0x31b   : > { %p1297_p9 = pnand %p1296_p7, %p1290_p13 }
 0x31d   : > { %1300 = shalt.err (!%p1297_p9)
}
 0x31e   : > { %s1913_s11 = smov 128   ;;  %s1439_s23 = smov 8   ;;  %v664_v46 = vpop.permute.xlu1 %663 }
 0x31f   : > { %1059 = dma.vmem_to_hbm [thread:$0]  (%p1645_p10), %s1748_s14, 512, %s1758_s19, %s1762_s30, %s1913_s11, %s1913_s11, %s1439_s23  }
 0x320   : > { %674 = vst.msk [vmem:[%s1735_s16 + $0x8] sm:$0xff] %vm672_vm2, %v664_v46  ;;  %s730_s17 = sshll.u32 %s1735_s16, 4  ;;  %s1933_s27 = sld [smem:[#allocation21_spill]]  ;;  %s1794_s17 = int_to_ptr.vmem [resolvable:$true] %s730_s17 }
 0x321   : > { %s706_s14 = scalar_lea.sflag [#allocation4], %s1700_s6  ;;  %s1301_s19 = scalar_lea.vmem %s1794_s17, 512 }
 0x322   : > { %v667_v47 = vpop.permute.xlu1 %666  ;;  %p1302_p0 = scmp.ne.s32.totalorder %s1794_s17, %s1301_s19  ;;  %s1440_s13 = smov [#allocation10]  }
 0x323   : > { %675 = vst.msk [vmem:[%s1735_s16 + $0x10] sm:$0xff] %vm672_vm2, %v667_v47  ;;  %s1305_s15 = sshll.u32 %s1440_s13, 4  ;;  %s1306_s15 = int_to_ptr.vmem [resolvable:$false] %s1305_s15 }
 0x324   : > { %p1303_p2 = pnand %p1302_p0, %p1645_p10  ;;  %s1307_s11 = scalar_lea.vmem %s1306_s15, 1024 }
 0x325   : > { %p1308_p8 = scmp.lt.s32.totalorder %s1794_s17, %s1306_s15  ;;  %p1309_p1 = scmp.lt.s32.totalorder %s1307_s11, %s1301_s19 }
 0x326   : > { %s1934_s21 = smov %s1933_s27  ;;  %s1800_s22 = scalar_lea.hbm %s1933_s27, %s1746_s24  ;;  %v670_v48 = vpop.permute.xlu1 %669 }
 0x327   : > { %676 = vst.msk [vmem:[%s1735_s16 + $0x18] sm:$0xff] %vm672_vm2, %v670_v48  ;;  %p1304_p4 = pneg %p1303_p2  ;;  %p1310_p12 = por %p1309_p1, %p1308_p8 }
 0x329   : > { %p1311_p13 = pnand %p1310_p12, %p1304_p4 }
 0x32b   : > { %1314 = shalt.err (!%p1311_p13)
}
 0x32c   : > { %s1315_s16 = scalar_lea.hbm %s1800_s22, 512  ;;  %s1319_s27 = scalar_lea.hbm %s1934_s21, 1024 }
 0x32d   : > { %p1316_p11 = scmp.ne.s32.totalorder %s1800_s22, %s1315_s16  ;;  %p1320_p5 = scmp.lt.u32.totalorder %s1800_s22, %s1934_s21 }
 0x32e   : > { %p1321_p7 = scmp.lt.u32.totalorder %s1319_s27, %s1315_s16  ;;  %p1323_p0 = scmp.lt.u32.totalorder %s1315_s16, %s1800_s22 }
 0x32f   : > { %p1317_p6 = pnand %p1316_p11, %p1645_p10 }
 0x330   : > { %p1322_p9 = por %p1321_p7, %p1320_p5 }
 0x331   : > { %p1318_p3 = pneg %p1317_p6 }
 0x332   : > { %p1324_p2 = por %p1323_p0, %p1322_p9 }
 0x334   : > { %p1325_p4 = pnand %p1324_p2, %p1318_p3 }
 0x336   : > { %1328 = shalt.err (!%p1325_p4)
}
 0x337   : > { %s1935_s11 = smov 128   ;;  %v693_v49 = vpop.permute.xlu1 %692  ;;  %s764_s19 = sshll.u32 %s1739_s12, 4  ;;  %s1836_s19 = int_to_ptr.vmem [resolvable:$true] %s764_s19 }
 0x338   : > { %1058 = dma.vmem_to_hbm [thread:$0]  (%p1645_p10), %s1794_s17, 512, %s1800_s22, %s706_s14, %s1935_s11, %s1935_s11, %s1439_s23  }
 0x339   : > { %702 = vst.msk [vmem:[%s1739_s12 + $0x8] sm:$0xff] %vm672_vm2, %v693_v49  ;;  %s1936_s26 = sld [smem:[#allocation22_spill]]  ;;  %s1329_s17 = scalar_lea.vmem %s1836_s19, 512 }
 0x33a   : > { %p1330_p8 = scmp.ne.s32.totalorder %s1836_s19, %s1329_s17  ;;  %s1441_s22 = smov [#allocation13]  }
 0x33b   : > { %v696_v50 = vpop.permute.xlu1 %695  ;;  %s1333_s14 = sshll.u32 %s1441_s22, 4  ;;  %s1334_s14 = int_to_ptr.vmem [resolvable:$false] %s1333_s14 }
 0x33c   : > { %703 = vst.msk [vmem:[%s1739_s12 + $0x10] sm:$0xff] %vm672_vm2, %v696_v50  ;;  %p1331_p1 = pnand %p1330_p8, %p1645_p10  ;;  %s1335_s27 = scalar_lea.vmem %s1334_s14, 1024 }
 0x33d   : > { %p1336_p13 = scmp.lt.s32.totalorder %s1836_s19, %s1334_s14  ;;  %p1337_p11 = scmp.lt.s32.totalorder %s1335_s27, %s1329_s17 }
 0x33e   : > { %p1332_p12 = pneg %p1331_p1 }
 0x33f   : > { %s1842_s20 = scalar_lea.hbm %s1936_s26, %s1746_s24  ;;  %v699_v51 = vpop.permute.xlu1 %698  ;;  %p1338_p6 = por %p1337_p11, %p1336_p13 }
 0x340   : > { %704 = vst.msk [vmem:[%s1739_s12 + $0x18] sm:$0xff] %vm672_vm2, %v699_v51 }
 0x341   : > { %p1339_p3 = pnand %p1338_p6, %p1332_p12 }
 0x343   : > { %1342 = shalt.err (!%p1339_p3)
}
 0x344   : > { %s1343_s12 = scalar_lea.hbm %s1842_s20, 512  ;;  %s1347_s15 = scalar_lea.hbm %s1936_s26, 1024 }
 0x345   : > { %p1344_p5 = scmp.ne.s32.totalorder %s1842_s20, %s1343_s12  ;;  %p1348_p0 = scmp.lt.u32.totalorder %s1842_s20, %s1936_s26 }
 0x346   : > { %p1349_p2 = scmp.lt.u32.totalorder %s1347_s15, %s1343_s12  ;;  %p1351_p8 = scmp.lt.u32.totalorder %s1343_s12, %s1842_s20 }
 0x347   : > { %p1345_p7 = pnand %p1344_p5, %p1645_p10 }
 0x348   : > { %p1350_p4 = por %p1349_p2, %p1348_p0 }
 0x349   : > { %p1346_p9 = pneg %p1345_p7 }
 0x34a   : > { %p1352_p1 = por %p1351_p8, %p1350_p4 }
 0x34c   : > { %p1353_p12 = pnand %p1352_p1, %p1346_p9 }
 0x34e   : > { %1356 = shalt.err (!%p1353_p12)
}
 0x34f   : > { %1060 = dma.vmem_to_hbm [thread:$0]  (%p1645_p10), %s1836_s19, 512, %s1842_s20, %s1762_s30, %s1935_s11, %s1935_s11, %s1439_s23  }
 0x350 PF: > { %s1937_s17 = sld [smem:[#allocation19_spill]]  ;;  %s1938_s22 = sld [smem:[#allocation20_spill]] }
 0x351   : > { %p1940_p11 = scmp.ge.s32.totalorder %s1423_s10, 2 }
 0x356   : > { %s779_s14 = sand.u32 1, %s1937_s17   ;;  %p1939_p13 = scmp.ne.s32.totalorder %s1938_s22, 0 }
 0x357   : > { %s780_s27 = scalar_lea.sflag [#allocation4], %s779_s14 }
 0x358   : > { %p1079_p6 = pnand %p1940_p11, %p1939_p13 }
 0x35a   : > { %1394 = dma.done.wait (!%p1079_p6), %s780_s27, 512  }
 0x35b   : > { %1396 = vsyncadd (!%p1079_p6), %s780_s27, 4294966784  ;;  %s1941_s8 = sadd.s32 4294967294, %s1423_s10  }
 0x35c   : > { %s788_s12 = sand.u32 1, %s1941_s8  }
 0x35d   : > { %s789_s24 = scalar_lea.sflag [#allocation12], %s788_s12 }
 0x35e   : > { %1398 = dma.done.wait (!%p1079_p6), %s789_s24, 1024  }
 0x35f   : > { %1400 = vsyncadd (!%p1079_p6), %s789_s24, 4294966272  ;;  %s30_s10 = sadd.s32 1, %s1423_s10   ;;  %s1942_s27 = smov %s1407_s28 }
 0x360   : > { %p27_p10 = scmp.ge.s32.totalorder %s30_s10, 4   ;;  %s1943_s28 = smov %s1411_s29 }
 0x361   : > { %s1944_s29 = smov %s1657_s25  ;;  %s1945_s30 = smov %s1419_s9 }
 0x362   : > { %s1946_s9 = smov %s1948_s18  ;;  %29 = sbr.rel (!%p27_p10) target bundleno = 13 (0xd), region = 133 }
 0x369   :  { %803 = vsyncpa [#allocation3], 1 }
 0x36a   :  { %805 = vsyncpa [#allocation3 + $0x1], 1 }
 0x36b   :  { %806 = vsyncpa [#allocation6], 1 }
 0x36c   :  { %807 = vsyncpa [#allocation9], 1 }
 0x36d   :  { %808 = vsyncpa [#allocation4], 1 }
 0x36e   :  { %810 = vsyncpa [#allocation4 + $0x1], 1 }
 0x36f   :  { %811 = vsyncpa [#allocation12], 1 }
 0x370   :  { %813 = vsyncpa [#allocation12 + $0x1], 1 }

</bundles_post_ra>
